<compile_context>
chip_gen: v7x
topology: tpu7x:2x2x1
jax: 0.10.0
libtpu: 0.0.40
codegen_flags: <defaults>
</compile_context>

<pallas_src>
import math

import jax
import jax.numpy as jnp
from jax import lax
from jax.experimental import pallas as pl
from jax.experimental.pallas import tpu as pltpu  # noqa: F401  (TPU backend)


# ----------------------------- Pallas kernel ------------------------------ #

def _decoder_step_kernel(x_ref, h0_ref, enc_ref, len_ref,
                         wa_e_ref, va_ref,
                         wh4_ref, bh4_ref,
                         wx3_ref, bi3_ref,
                         wo_ref, bo_ref,
                         y_ref, h_ref, attn_ref):
    t_src, b, hdim = enc_ref.shape

    x = x_ref[...]                       # (B, D_out)  decoder input
    h = h0_ref[...]                      # (B, H)      last hidden
    enc = enc_ref[...]                   # (T, B, H)   encoder outputs

    # ---- fused recurrent projection: GRU h-gates + attention h-term -> (B, 4H) ----
    gh_all = jnp.dot(h, wh4_ref[...], preferred_element_type=jnp.float32) + bh4_ref[...]
    gh_r = gh_all[:, 0 * hdim:1 * hdim]
    gh_z = gh_all[:, 1 * hdim:2 * hdim]
    gh_n = gh_all[:, 2 * hdim:3 * hdim]
    att_h = gh_all[:, 3 * hdim:4 * hdim]          # h @ Wa_h + b_a (attention bias folded in)

    # ---- attention energies: relu(enc @ Wa_e + h @ Wa_h + b_a) . v ----
    att_e = jnp.dot(enc.reshape(t_src * b, hdim), wa_e_ref[...],
                    preferred_element_type=jnp.float32).reshape(t_src, b, hdim)
    energy = jnp.maximum(att_e + att_h[None, :, :], 0.0)            # (T, B, H)
    scores = jnp.sum(energy * va_ref[...][None, :, :], axis=-1)     # (T, B)

    # ---- length-masked softmax over the time axis ----
    lens = len_ref[...]                                             # (1, B) int32
    valid = lax.broadcasted_iota(jnp.int32, (t_src, b), 0) < lens   # (T, B)
    scores = jnp.where(valid, scores, -1e30)
    m = jnp.max(scores, axis=0, keepdims=True)
    e = jnp.where(valid, jnp.exp(scores - m), 0.0)
    attn = e * pl.reciprocal(jnp.sum(e, axis=0, keepdims=True), approx=True)   # (T, B)

    context = jnp.sum(attn[:, :, None] * enc, axis=0)               # (B, H)

    # ---- GRU cell, input = [x ; context]  (PyTorch gate order r, z, n) ----
    x_gru = jnp.concatenate([x, context], axis=1)                   # (B, D_out + H)
    gi_all = jnp.dot(x_gru, wx3_ref[...], preferred_element_type=jnp.float32) + bi3_ref[...]
    r = jax.nn.sigmoid(gi_all[:, 0 * hdim:1 * hdim] + gh_r)
    z = jax.nn.sigmoid(gi_all[:, 1 * hdim:2 * hdim] + gh_z)
    n = jnp.tanh(gi_all[:, 2 * hdim:3 * hdim] + r * gh_n)
    h_new = (1.0 - z) * n + z * h                                   # (B, H)

    # ---- output projection on [h_new ; context] ----
    y = jnp.dot(jnp.concatenate([h_new, context], axis=1), wo_ref[...],
                preferred_element_type=jnp.float32) + bo_ref[...]   # (B, D_out)

    y_ref[...] = y
    h_ref[...] = h_new
    attn_ref[...] = attn                                            # (T, B); wrapper transposes


# ------------------------------ JAX wrapper -------------------------------- #

def _full_spec(shape):
    nd = len(shape)
    return pl.BlockSpec(shape, lambda i: (0,) * nd)


def decoder_forward(params, x, last_hidden, enc_out, len_seq):
    """Mirrors Decoder.forward(input, last_hidden, encoder_outputs, len_seq)."""
    t_src, b, hdim = enc_out.shape
    d_out = x.shape[1]

    # PyTorch-layout params -> fused right-multiply matrices (built once, outside kernel).
    wa = params['attn_w']                               # (H, 2H): columns = [hidden | enc]
    wa_h = wa[:, :hdim].T                               # (H, H)
    wa_e = wa[:, hdim:].T                               # (H, H)
    ba = params['attn_b']                               # (H,)
    va = params['attn_v'].reshape(1, hdim)

    wh4 = jnp.concatenate([params['gru_whh'].T, wa_h], axis=1)                 # (H, 4H)
    bh4 = jnp.concatenate([params['gru_bhh'], ba]).reshape(1, 4 * hdim)        # (1, 4H)
    wx3 = params['gru_wih'].T                                                  # (D_out+H, 3H)
    bi3 = params['gru_bih'].reshape(1, 3 * hdim)                               # (1, 3H)

    wo = params['out_w'].T                                                     # (2H, D_out)
    bo = params['out_b'].reshape(1, d_out)

    h0 = last_hidden[-1]                                                       # (B, H)
    len2d = len_seq.reshape(1, b).astype(jnp.int32)

    args = (x, h0, enc_out, len2d, wa_e, va, wh4, bh4, wx3, bi3, wo, bo)
    y, h_new, attn_tb = pl.pallas_call(
        _decoder_step_kernel,
        out_shape=(jax.ShapeDtypeStruct((b, d_out), jnp.float32),
                   jax.ShapeDtypeStruct((b, hdim), jnp.float32),
                   jax.ShapeDtypeStruct((t_src, b), jnp.float32)),
        grid=(1,),
        in_specs=[_full_spec(a.shape) for a in args],
        out_specs=(_full_spec((b, d_out)),
                   _full_spec((b, hdim)),
                   _full_spec((t_src, b))),
    )(*args)

    hidden = h_new[None]                      # (1, B, H)  — n_layers == 1
    attn_weights = attn_tb.T[:, None, :]      # (B, 1, T)  — as in the PyTorch module
    return y, hidden, attn_weights


# ------------------------ params + pure-JAX reference ----------------------- #

def init_params(key, hidden_size, output_size):
    h, d = hidden_size, output_size
    ks = jax.random.split(key, 9)

    def u(k, shape, bound):
        return jax.random.uniform(k, shape, jnp.float32, -bound, bound)

    k_attn = 1.0 / math.sqrt(2.0 * h)
    k_gru = 1.0 / math.sqrt(1.0 * h)
    k_out = 1.0 / math.sqrt(2.0 * h)
    k_v = 1.0 / math.sqrt(1.0 * h)
    return dict(
        attn_w=u(ks[0], (h, 2 * h), k_attn),      # Attention.attn: Linear(2H, H)
        attn_b=u(ks[1], (h,), k_attn),
        attn_v=u(ks[2], (h,), k_v),               # Attention.v
        gru_wih=u(ks[3], (3 * h, d + h), k_gru),  # GRU weight_ih_l0 (gate order r, z, n)
        gru_whh=u(ks[4], (3 * h, h), k_gru),      # GRU weight_hh_l0
        gru_bih=u(ks[5], (3 * h,), k_gru),
        gru_bhh=u(ks[6], (3 * h,), k_gru),
        out_w=u(ks[7], (d, 2 * h), k_out),        # out: Linear(2H, D_out)
        out_b=u(ks[8], (d,), k_out),
    )


def ref_decoder_forward(p, x, last_hidden, enc_out, len_seq):
    """Pure-JAX reference replicating the PyTorch Decoder.forward semantics."""
    t_src, b, h = enc_out.shape
    hid = last_hidden[-1]                                      # (B, H)

    # Attention.score: relu(Linear(cat([h, enc]))) . v
    enc_bt = jnp.transpose(enc_out, (1, 0, 2))                 # (B, T, H)
    h_rep = jnp.broadcast_to(hid[:, None, :], (b, t_src, h))
    cat = jnp.concatenate([h_rep, enc_bt], axis=2)             # (B, T, 2H)
    energy = jax.nn.relu(cat @ p['attn_w'].T + p['attn_b'])    # (B, T, H)
    scores = jnp.einsum('bth,h->bt', energy, p['attn_v'])      # (B, T)

    # Attention.forward: softmax over the first len_seq[i] steps, zeros after.
    mask = jnp.arange(t_src)[None, :] < len_seq[:, None]
    s = jnp.where(mask, scores, -jnp.inf)
    m = jnp.max(s, axis=1, keepdims=True)
    e = jnp.where(mask, jnp.exp(s - m), 0.0)
    attn = e / jnp.sum(e, axis=1, keepdims=True)               # (B, T)
    attn_weights = attn[:, None, :]                            # (B, 1, T)

    context = jnp.einsum('bt,bth->bh', attn, enc_bt)           # (B, H)

    # GRU cell on cat([x, context]) (PyTorch gate order r, z, n).
    x_gru = jnp.concatenate([x, context], axis=1)
    gi = x_gru @ p['gru_wih'].T + p['gru_bih']
    gh = hid @ p['gru_whh'].T + p['gru_bhh']
    r = jax.nn.sigmoid(gi[:, :h] + gh[:, :h])
    z = jax.nn.sigmoid(gi[:, h:2 * h] + gh[:, h:2 * h])
    n = jnp.tanh(gi[:, 2 * h:] + r * gh[:, 2 * h:])
    h_new = (1.0 - z) * n + z * hid

    y = jnp.concatenate([h_new, context], axis=1) @ p['out_w'].T + p['out_b']
    return y, h_new[None], attn_weights


# ----------------------------------- main ----------------------------------- #

if __name__ == "__main__":
    T_SRC, B, H, D_OUT = 8, 8, 32, 16

    key = jax.random.PRNGKey(0)
    k1, k2, k3, k4, kp = jax.random.split(key, 5)
    x = jax.random.normal(k1, (B, D_OUT), jnp.float32)             # decoder input
    last_hidden = jax.random.normal(k2, (1, B, H), jnp.float32)    # n_layers == 1
    enc_out = jax.random.normal(k3, (T_SRC, B, H), jnp.float32)    # encoder outputs
    len_seq = jax.random.randint(k4, (B,), 3, T_SRC + 1).astype(jnp.int32)
    params = init_params(kp, H, D_OUT)

    y, hidden, attn_w = decoder_forward(params, x, last_hidden, enc_out, len_seq)
    y = jax.block_until_ready(y)
    assert y.shape == (B, D_OUT)
    assert hidden.shape == (1, B, H)
    assert attn_w.shape == (B, 1, T_SRC)

    y_r, h_r, a_r = ref_decoder_forward(params, x, last_hidden, enc_out, len_seq)
    max_err = max(float(jnp.max(jnp.abs(y - y_r))),
                  float(jnp.max(jnp.abs(hidden - h_r))),
                  float(jnp.max(jnp.abs(attn_w - a_r))))
    assert max_err < 2e-2, f"kernel/reference mismatch: max_err={max_err}"

    print("KERNEL_OK")
</pallas_src>

<mosaic_0001>
module attributes {stable_mosaic.version = 11 : i64} {
  func.func @_decoder_step_kernel(%arg0: i32, %arg1: memref<8x16xf32, #tpu.memory_space<vmem>>, %arg2: memref<8x32xf32, #tpu.memory_space<vmem>>, %arg3: memref<8x8x32xf32, #tpu.memory_space<vmem>>, %arg4: memref<1x8xi32, #tpu.memory_space<vmem>>, %arg5: memref<32x32xf32, #tpu.memory_space<vmem>>, %arg6: memref<1x32xf32, #tpu.memory_space<vmem>>, %arg7: memref<32x128xf32, #tpu.memory_space<vmem>>, %arg8: memref<1x128xf32, #tpu.memory_space<vmem>>, %arg9: memref<48x96xf32, #tpu.memory_space<vmem>>, %arg10: memref<1x96xf32, #tpu.memory_space<vmem>>, %arg11: memref<64x16xf32, #tpu.memory_space<vmem>>, %arg12: memref<1x16xf32, #tpu.memory_space<vmem>>, %arg13: memref<8x16xf32, #tpu.memory_space<vmem>>, %arg14: memref<8x32xf32, #tpu.memory_space<vmem>>, %arg15: memref<8x8xf32, #tpu.memory_space<vmem>>) attributes {dimension_semantics = [#tpu.dimension_semantics<arbitrary>], iteration_bounds = array<i64: 1>, scalar_prefetch = 0 : i64, scratch_operands = 0 : i64, tpu.core_type = #tpu.core_type<tc>, window_params = [{pipeline_mode = #tpu.pipeline_mode<synchronous>, transform_indices = @transform_0, window_bounds = array<i64: 8, 16>}, {pipeline_mode = #tpu.pipeline_mode<synchronous>, transform_indices = @transform_1, window_bounds = array<i64: 8, 32>}, {pipeline_mode = #tpu.pipeline_mode<synchronous>, transform_indices = @transform_2, window_bounds = array<i64: 8, 8, 32>}, {pipeline_mode = #tpu.pipeline_mode<synchronous>, transform_indices = @transform_3, window_bounds = array<i64: 1, 8>}, {pipeline_mode = #tpu.pipeline_mode<synchronous>, transform_indices = @transform_4, window_bounds = array<i64: 32, 32>}, {pipeline_mode = #tpu.pipeline_mode<synchronous>, transform_indices = @transform_5, window_bounds = array<i64: 1, 32>}, {pipeline_mode = #tpu.pipeline_mode<synchronous>, transform_indices = @transform_6, window_bounds = array<i64: 32, 128>}, {pipeline_mode = #tpu.pipeline_mode<synchronous>, transform_indices = @transform_7, window_bounds = array<i64: 1, 128>}, {pipeline_mode = #tpu.pipeline_mode<synchronous>, transform_indices = @transform_8, window_bounds = array<i64: 48, 96>}, {pipeline_mode = #tpu.pipeline_mode<synchronous>, transform_indices = @transform_9, window_bounds = array<i64: 1, 96>}, {pipeline_mode = #tpu.pipeline_mode<synchronous>, transform_indices = @transform_10, window_bounds = array<i64: 64, 16>}, {pipeline_mode = #tpu.pipeline_mode<synchronous>, transform_indices = @transform_11, window_bounds = array<i64: 1, 16>}, {pipeline_mode = #tpu.pipeline_mode<synchronous>, transform_indices = @transform_12, window_bounds = array<i64: 8, 16>}, {pipeline_mode = #tpu.pipeline_mode<synchronous>, transform_indices = @transform_13, window_bounds = array<i64: 8, 32>}, {pipeline_mode = #tpu.pipeline_mode<synchronous>, transform_indices = @transform_14, window_bounds = array<i64: 8, 8>}]} {
    %c0 = arith.constant 0 : index
    %c0_0 = arith.constant 0 : index
    %0 = vector.load %arg1[%c0, %c0_0] : memref<8x16xf32, #tpu.memory_space<vmem>>, vector<8x16xf32>
    %c0_1 = arith.constant 0 : index
    %c0_2 = arith.constant 0 : index
    %1 = vector.load %arg2[%c0_1, %c0_2] : memref<8x32xf32, #tpu.memory_space<vmem>>, vector<8x32xf32>
    %c0_3 = arith.constant 0 : index
    %c0_4 = arith.constant 0 : index
    %c0_5 = arith.constant 0 : index
    %2 = vector.load %arg3[%c0_3, %c0_4, %c0_5] : memref<8x8x32xf32, #tpu.memory_space<vmem>>, vector<8x8x32xf32>
    %c0_6 = arith.constant 0 : index
    %c0_7 = arith.constant 0 : index
    %3 = vector.load %arg7[%c0_6, %c0_7] : memref<32x128xf32, #tpu.memory_space<vmem>>, vector<32x128xf32>
    %cst = arith.constant dense<0.000000e+00> : vector<8x128xf32>
    %4 = tpu.matmul %1, %3, %cst {dimension_numbers = #tpu.dot_dimension_numbers<[1], [0], [0], [1], [0, 0, 1, 1], [], []>} : vector<8x32xf32>, vector<32x128xf32>, vector<8x128xf32> -> vector<8x128xf32>
    %c0_8 = arith.constant 0 : index
    %c0_9 = arith.constant 0 : index
    %5 = vector.load %arg8[%c0_8, %c0_9] : memref<1x128xf32, #tpu.memory_space<vmem>>, vector<1x128xf32>
    %6 = vector.broadcast %5 : vector<1x128xf32> to vector<8x128xf32>
    %7 = arith.addf %4, %6 : vector<8x128xf32>
    %8 = vector.extract_strided_slice %7 {offsets = [0, 0], sizes = [8, 32], strides = [1, 1]} : vector<8x128xf32> to vector<8x32xf32>
    %9 = vector.extract_strided_slice %7 {offsets = [0, 32], sizes = [8, 32], strides = [1, 1]} : vector<8x128xf32> to vector<8x32xf32>
    %10 = vector.extract_strided_slice %7 {offsets = [0, 64], sizes = [8, 32], strides = [1, 1]} : vector<8x128xf32> to vector<8x32xf32>
    %11 = vector.extract_strided_slice %7 {offsets = [0, 96], sizes = [8, 32], strides = [1, 1]} : vector<8x128xf32> to vector<8x32xf32>
    %12 = vector.shape_cast %2 : vector<8x8x32xf32> to vector<64x32xf32>
    %c0_10 = arith.constant 0 : index
    %c0_11 = arith.constant 0 : index
    %13 = vector.load %arg5[%c0_10, %c0_11] : memref<32x32xf32, #tpu.memory_space<vmem>>, vector<32x32xf32>
    %cst_12 = arith.constant dense<0.000000e+00> : vector<64x32xf32>
    %14 = tpu.matmul %12, %13, %cst_12 {dimension_numbers = #tpu.dot_dimension_numbers<[1], [0], [0], [1], [0, 0, 1, 1], [], []>} : vector<64x32xf32>, vector<32x32xf32>, vector<64x32xf32> -> vector<64x32xf32>
    %15 = vector.shape_cast %14 : vector<64x32xf32> to vector<8x8x32xf32>
    %16 = vector.shape_cast %11 : vector<8x32xf32> to vector<1x8x32xf32>
    %17 = vector.broadcast %16 : vector<1x8x32xf32> to vector<8x8x32xf32>
    %18 = arith.addf %15, %17 : vector<8x8x32xf32>
    %cst_13 = arith.constant 0.000000e+00 : f32
    %19 = vector.broadcast %cst_13 : f32 to vector<8x8x32xf32>
    %20 = arith.maximumf %18, %19 : vector<8x8x32xf32>
    %c0_14 = arith.constant 0 : index
    %c0_15 = arith.constant 0 : index
    %21 = vector.load %arg6[%c0_14, %c0_15] : memref<1x32xf32, #tpu.memory_space<vmem>>, vector<1x32xf32>
    %22 = vector.shape_cast %21 : vector<1x32xf32> to vector<1x1x32xf32>
    %23 = vector.broadcast %22 : vector<1x1x32xf32> to vector<8x8x32xf32>
    %24 = arith.mulf %20, %23 : vector<8x8x32xf32>
    %cst_16 = arith.constant dense<0.000000e+00> : vector<8x8xf32>
    %25 = vector.multi_reduction <add>, %24, %cst_16 [2] : vector<8x8x32xf32> to vector<8x8xf32>
    %c0_17 = arith.constant 0 : index
    %c0_18 = arith.constant 0 : index
    %26 = vector.load %arg4[%c0_17, %c0_18] : memref<1x8xi32, #tpu.memory_space<vmem>>, vector<1x8xi32>
    %27 = tpu.iota {dimensions = array<i32: 0>} : vector<8x8xi32>
    %28 = vector.broadcast %26 : vector<1x8xi32> to vector<8x8xi32>
    %29 = arith.cmpi slt, %27, %28 : vector<8x8xi32>
    %cst_19 = arith.constant -1.000000e+30 : f32
    %30 = vector.broadcast %cst_19 : f32 to vector<8x8xf32>
    %31 = arith.select %29, %25, %30 : vector<8x8xi1>, vector<8x8xf32>
    %cst_20 = arith.constant dense<0xFF800000> : vector<8xf32>
    %32 = vector.multi_reduction <maximumf>, %31, %cst_20 [0] : vector<8x8xf32> to vector<8xf32>
    %33 = vector.shape_cast %32 : vector<8xf32> to vector<1x8xf32>
    %34 = vector.broadcast %33 : vector<1x8xf32> to vector<8x8xf32>
    %35 = arith.subf %31, %34 : vector<8x8xf32>
    %36 = math.exp %35 : vector<8x8xf32>
    %cst_21 = arith.constant 0.000000e+00 : f32
    %37 = vector.broadcast %cst_21 : f32 to vector<8x8xf32>
    %38 = arith.select %29, %36, %37 : vector<8x8xi1>, vector<8x8xf32>
    %cst_22 = arith.constant dense<0.000000e+00> : vector<8xf32>
    %39 = vector.multi_reduction <add>, %38, %cst_22 [0] : vector<8x8xf32> to vector<8xf32>
    %40 = vector.shape_cast %39 : vector<8xf32> to vector<1x8xf32>
    %41 = tpu.reciprocal %40 {approx = true} : vector<1x8xf32> -> vector<1x8xf32>
    %42 = vector.broadcast %41 : vector<1x8xf32> to vector<8x8xf32>
    %43 = arith.mulf %38, %42 : vector<8x8xf32>
    %44 = vector.shape_cast %43 : vector<8x8xf32> to vector<8x8x1xf32>
    %45 = vector.broadcast %44 : vector<8x8x1xf32> to vector<8x8x32xf32>
    %46 = arith.mulf %45, %2 : vector<8x8x32xf32>
    %cst_23 = arith.constant dense<0.000000e+00> : vector<8x32xf32>
    %47 = vector.multi_reduction <add>, %46, %cst_23 [0] : vector<8x8x32xf32> to vector<8x32xf32>
    %48 = tpu.concatenate %0, %47 in 1 : vector<8x16xf32>, vector<8x32xf32> -> vector<8x48xf32>
    %c0_24 = arith.constant 0 : index
    %c0_25 = arith.constant 0 : index
    %49 = vector.load %arg9[%c0_24, %c0_25] : memref<48x96xf32, #tpu.memory_space<vmem>>, vector<48x96xf32>
    %cst_26 = arith.constant dense<0.000000e+00> : vector<8x96xf32>
    %50 = tpu.matmul %48, %49, %cst_26 {dimension_numbers = #tpu.dot_dimension_numbers<[1], [0], [0], [1], [0, 0, 1, 1], [], []>} : vector<8x48xf32>, vector<48x96xf32>, vector<8x96xf32> -> vector<8x96xf32>
    %c0_27 = arith.constant 0 : index
    %c0_28 = arith.constant 0 : index
    %51 = vector.load %arg10[%c0_27, %c0_28] : memref<1x96xf32, #tpu.memory_space<vmem>>, vector<1x96xf32>
    %52 = vector.broadcast %51 : vector<1x96xf32> to vector<8x96xf32>
    %53 = arith.addf %50, %52 : vector<8x96xf32>
    %54 = vector.extract_strided_slice %53 {offsets = [0, 0], sizes = [8, 32], strides = [1, 1]} : vector<8x96xf32> to vector<8x32xf32>
    %55 = arith.addf %54, %8 : vector<8x32xf32>
    %56 = arith.negf %55 : vector<8x32xf32>
    %57 = math.exp %56 : vector<8x32xf32>
    %cst_29 = arith.constant 1.000000e+00 : f32
    %58 = vector.broadcast %cst_29 : f32 to vector<8x32xf32>
    %59 = arith.addf %58, %57 : vector<8x32xf32>
    %60 = arith.divf %58, %59 : vector<8x32xf32>
    %61 = vector.extract_strided_slice %53 {offsets = [0, 32], sizes = [8, 32], strides = [1, 1]} : vector<8x96xf32> to vector<8x32xf32>
    %62 = arith.addf %61, %9 : vector<8x32xf32>
    %63 = arith.negf %62 : vector<8x32xf32>
    %64 = math.exp %63 : vector<8x32xf32>
    %cst_30 = arith.constant 1.000000e+00 : f32
    %65 = vector.broadcast %cst_30 : f32 to vector<8x32xf32>
    %66 = arith.addf %65, %64 : vector<8x32xf32>
    %67 = arith.divf %65, %66 : vector<8x32xf32>
    %68 = vector.extract_strided_slice %53 {offsets = [0, 64], sizes = [8, 32], strides = [1, 1]} : vector<8x96xf32> to vector<8x32xf32>
    %69 = arith.mulf %60, %10 : vector<8x32xf32>
    %70 = arith.addf %68, %69 : vector<8x32xf32>
    %71 = math.tanh %70 : vector<8x32xf32>
    %cst_31 = arith.constant 1.000000e+00 : f32
    %72 = vector.broadcast %cst_31 : f32 to vector<8x32xf32>
    %73 = arith.subf %72, %67 : vector<8x32xf32>
    %74 = arith.mulf %73, %71 : vector<8x32xf32>
    %75 = arith.mulf %67, %1 : vector<8x32xf32>
    %76 = arith.addf %74, %75 : vector<8x32xf32>
    %77 = tpu.concatenate %76, %47 in 1 : vector<8x32xf32>, vector<8x32xf32> -> vector<8x64xf32>
    %c0_32 = arith.constant 0 : index
    %c0_33 = arith.constant 0 : index
    %78 = vector.load %arg11[%c0_32, %c0_33] : memref<64x16xf32, #tpu.memory_space<vmem>>, vector<64x16xf32>
    %cst_34 = arith.constant dense<0.000000e+00> : vector<8x16xf32>
    %79 = tpu.matmul %77, %78, %cst_34 {dimension_numbers = #tpu.dot_dimension_numbers<[1], [0], [0], [1], [0, 0, 1, 1], [], []>} : vector<8x64xf32>, vector<64x16xf32>, vector<8x16xf32> -> vector<8x16xf32>
    %c0_35 = arith.constant 0 : index
    %c0_36 = arith.constant 0 : index
    %80 = vector.load %arg12[%c0_35, %c0_36] : memref<1x16xf32, #tpu.memory_space<vmem>>, vector<1x16xf32>
    %81 = vector.broadcast %80 : vector<1x16xf32> to vector<8x16xf32>
    %82 = arith.addf %79, %81 : vector<8x16xf32>
    %c0_37 = arith.constant 0 : index
    %c0_38 = arith.constant 0 : index
    %83 = vector.load %arg13[%c0_37, %c0_38] : memref<8x16xf32, #tpu.memory_space<vmem>>, vector<8x16xf32>
    tpu.vector_store %arg13[%c0_37, %c0_38], %82 {strides = array<i32>} : memref<8x16xf32, #tpu.memory_space<vmem>>, vector<8x16xf32>,
    %c0_39 = arith.constant 0 : index
    %c0_40 = arith.constant 0 : index
    %84 = vector.load %arg14[%c0_39, %c0_40] : memref<8x32xf32, #tpu.memory_space<vmem>>, vector<8x32xf32>
    tpu.vector_store %arg14[%c0_39, %c0_40], %76 {strides = array<i32>} : memref<8x32xf32, #tpu.memory_space<vmem>>, vector<8x32xf32>,
    %c0_41 = arith.constant 0 : index
    %c0_42 = arith.constant 0 : index
    %85 = vector.load %arg15[%c0_41, %c0_42] : memref<8x8xf32, #tpu.memory_space<vmem>>, vector<8x8xf32>
    tpu.vector_store %arg15[%c0_41, %c0_42], %43 {strides = array<i32>} : memref<8x8xf32, #tpu.memory_space<vmem>>, vector<8x8xf32>,
    return
  }
  func.func @transform_0(%arg0: i32) -> (i32, i32) {
    %c0_i32 = arith.constant 0 : i32
    %c0_i32_0 = arith.constant 0 : i32
    %c0_i32_1 = arith.constant 0 : i32
    return %c0_i32, %c0_i32_0 : i32, i32
  }
  func.func @transform_1(%arg0: i32) -> (i32, i32) {
    %c0_i32 = arith.constant 0 : i32
    %c0_i32_0 = arith.constant 0 : i32
    %c0_i32_1 = arith.constant 0 : i32
    return %c0_i32, %c0_i32_0 : i32, i32
  }
  func.func @transform_2(%arg0: i32) -> (i32, i32, i32) {
    %c0_i32 = arith.constant 0 : i32
    %c0_i32_0 = arith.constant 0 : i32
    %c0_i32_1 = arith.constant 0 : i32
    %c0_i32_2 = arith.constant 0 : i32
    return %c0_i32, %c0_i32_0, %c0_i32_1 : i32, i32, i32
  }
  func.func @transform_3(%arg0: i32) -> (i32, i32) {
    %c0_i32 = arith.constant 0 : i32
    %c0_i32_0 = arith.constant 0 : i32
    %c0_i32_1 = arith.constant 0 : i32
    return %c0_i32, %c0_i32_0 : i32, i32
  }
  func.func @transform_4(%arg0: i32) -> (i32, i32) {
    %c0_i32 = arith.constant 0 : i32
    %c0_i32_0 = arith.constant 0 : i32
    %c0_i32_1 = arith.constant 0 : i32
    return %c0_i32, %c0_i32_0 : i32, i32
  }
  func.func @transform_5(%arg0: i32) -> (i32, i32) {
    %c0_i32 = arith.constant 0 : i32
    %c0_i32_0 = arith.constant 0 : i32
    %c0_i32_1 = arith.constant 0 : i32
    return %c0_i32, %c0_i32_0 : i32, i32
  }
  func.func @transform_6(%arg0: i32) -> (i32, i32) {
    %c0_i32 = arith.constant 0 : i32
    %c0_i32_0 = arith.constant 0 : i32
    %c0_i32_1 = arith.constant 0 : i32
    return %c0_i32, %c0_i32_0 : i32, i32
  }
  func.func @transform_7(%arg0: i32) -> (i32, i32) {
    %c0_i32 = arith.constant 0 : i32
    %c0_i32_0 = arith.constant 0 : i32
    %c0_i32_1 = arith.constant 0 : i32
    return %c0_i32, %c0_i32_0 : i32, i32
  }
  func.func @transform_8(%arg0: i32) -> (i32, i32) {
    %c0_i32 = arith.constant 0 : i32
    %c0_i32_0 = arith.constant 0 : i32
    %c0_i32_1 = arith.constant 0 : i32
    return %c0_i32, %c0_i32_0 : i32, i32
  }
  func.func @transform_9(%arg0: i32) -> (i32, i32) {
    %c0_i32 = arith.constant 0 : i32
    %c0_i32_0 = arith.constant 0 : i32
    %c0_i32_1 = arith.constant 0 : i32
    return %c0_i32, %c0_i32_0 : i32, i32
  }
  func.func @transform_10(%arg0: i32) -> (i32, i32) {
    %c0_i32 = arith.constant 0 : i32
    %c0_i32_0 = arith.constant 0 : i32
    %c0_i32_1 = arith.constant 0 : i32
    return %c0_i32, %c0_i32_0 : i32, i32
  }
  func.func @transform_11(%arg0: i32) -> (i32, i32) {
    %c0_i32 = arith.constant 0 : i32
    %c0_i32_0 = arith.constant 0 : i32
    %c0_i32_1 = arith.constant 0 : i32
    return %c0_i32, %c0_i32_0 : i32, i32
  }
  func.func @transform_12(%arg0: i32) -> (i32, i32) {
    %c0_i32 = arith.constant 0 : i32
    %c0_i32_0 = arith.constant 0 : i32
    %c0_i32_1 = arith.constant 0 : i32
    return %c0_i32, %c0_i32_0 : i32, i32
  }
  func.func @transform_13(%arg0: i32) -> (i32, i32) {
    %c0_i32 = arith.constant 0 : i32
    %c0_i32_0 = arith.constant 0 : i32
    %c0_i32_1 = arith.constant 0 : i32
    return %c0_i32, %c0_i32_0 : i32, i32
  }
  func.func @transform_14(%arg0: i32) -> (i32, i32) {
    %c0_i32 = arith.constant 0 : i32
    %c0_i32_0 = arith.constant 0 : i32
    %c0_i32_1 = arith.constant 0 : i32
    return %c0_i32, %c0_i32_0 : i32, i32
  }
}

</mosaic_0001>

<bundles_post_ra>
// kernel: tpu_custom_call.1
= control target key start
LH: loop header
LB: loop body
LE: loop exit
PB: predicated region body
PF: predicated region fallthrough
CT: control target
= control target key end

     0   :  { %20 = vsyncpa [#allocation3], 0  ;;  %s1610_s0 = inlined_call_operand.hbm [shape: f32[8,16], index: 0, kind: input, shape index: {}]   ;;  %s1611_s1 = inlined_call_operand.hbm [shape: f32[8,32], index: 1, kind: input, shape index: {}]   ;;  %s1612_s2 = inlined_call_operand.vmem [shape: f32[8,8,32], index: 2, kind: input, shape index: {}]   ;;  %s1613_s3 = inlined_call_operand.vmem [shape: s32[1,8], index: 3, kind: input, shape index: {}]   ;;  %s1614_s4 = inlined_call_operand.hbm [shape: f32[32,32], index: 4, kind: input, shape index: {}]   ;;  %s1615_s5 = inlined_call_operand.vmem [shape: f32[1,32], index: 5, kind: input, shape index: {}]   ;;  %s1616_s6 = inlined_call_operand.vmem [shape: f32[32,128], index: 6, kind: input, shape index: {}]   ;;  %s1617_s7 = inlined_call_operand.hbm [shape: f32[1,128], index: 7, kind: input, shape index: {}]   ;;  %s1618_s8 = inlined_call_operand.hbm [shape: f32[48,96], index: 8, kind: input, shape index: {}]   ;;  %s1619_s9 = inlined_call_operand.hbm [shape: f32[1,96], index: 9, kind: input, shape index: {}]   ;;  %s1620_s10 = inlined_call_operand.vmem [shape: f32[64,16], index: 10, kind: input, shape index: {}]   ;;  %s1621_s11 = inlined_call_operand.vmem [shape: f32[1,16], index: 11, kind: input, shape index: {}]   ;;  %s1622_s12 = inlined_call_operand.hbm [shape: f32[8,16], index: 12, kind: output, shape index: {0}]   ;;  %s1623_s13 = inlined_call_operand.hbm [shape: f32[8,32], index: 13, kind: output, shape index: {1}]   ;;  %s1624_s14 = inlined_call_operand.hbm [shape: f32[8,8], index: 14, kind: output, shape index: {2}]  }
   0x1   :  { %21 = vsyncpa [#allocation6], 0 }
   0x2   :  { %22 = vsyncpa [#allocation9], 0 }
   0x3   :  { %23 = vsyncpa [#allocation12], 0 }
   0x4   :  { %24 = vsyncpa [#allocation4], 0 }
   0x5   :  { %25 = vsyncpa [#allocation15], 0  ;;  %s1227_s29 = smov [#allocation5]   ;;  %s1228_s15 = smov [#allocation8]  }
   0x6   :  { %s42_s30 = sshll.u32 %s1227_s29, 4  ;;  %s72_s16 = sshll.u32 %s1228_s15, 4  ;;  %s43_s30 = int_to_ptr.vmem [resolvable:$true] %s42_s30  ;;  %s73_s16 = int_to_ptr.vmem [resolvable:$true] %s72_s16 }
   0x7   :  { %s1017_s19 = scalar_lea.hbm %s1611_s1, 128 }
   0x8   :  { %p1018_p0 = scmp.ne.s32.totalorder %s1611_s1, %s1017_s19  ;;  %p1021_p1 = scmp.lt.u32.totalorder %s1017_s19, %s1611_s1 }
   0xa   :  { %p1023_p2 = pnand %p1021_p1, %p1018_p0 }
   0xc   :  { %1026 = shalt.err (!%p1023_p2)
}
   0xd   :  { %s1027_s24 = scalar_lea.vmem %s43_s30, 128  ;;  %p1032_p4 = scmp.lt.s32.totalorder %s43_s30, %s43_s30 }
   0xe   :  { %p1028_p3 = scmp.ne.s32.totalorder %s43_s30, %s1027_s24  ;;  %p1033_p5 = scmp.lt.s32.totalorder %s1027_s24, %s1027_s24 }
  0x10   :  { %p1034_p6 = por %p1033_p5, %p1032_p4 }
  0x12   :  { %p1035_p7 = pnand %p1034_p6, %p1028_p3 }
  0x14   :  { %1038 = shalt.err (!%p1035_p7)
}
  0x15   :  { %45 = dma.hbm_to_vmem [thread:$0]  %s1611_s1, 128, %s43_s30, [#allocation6]  }
  0x16   :  { %s1039_s29 = scalar_lea.hbm %s1617_s7, 16 }
  0x17   :  { %p1040_p8 = scmp.ne.s32.totalorder %s1617_s7, %s1039_s29  ;;  %p1043_p9 = scmp.lt.u32.totalorder %s1039_s29, %s1617_s7 }
  0x19   :  { %p1045_p10 = pnand %p1043_p9, %p1040_p8 }
  0x1b   :  { %1048 = shalt.err (!%p1045_p10)
}
  0x1c   :  { %s1049_s20 = scalar_lea.vmem %s73_s16, 16  ;;  %s1053_s21 = scalar_lea.vmem %s73_s16, 32 }
  0x1d   :  { %p1050_p11 = scmp.ne.s32.totalorder %s73_s16, %s1049_s20  ;;  %p1054_p12 = scmp.lt.s32.totalorder %s73_s16, %s73_s16 }
  0x1e   :  { %p1055_p13 = scmp.lt.s32.totalorder %s1053_s21, %s1049_s20 }
  0x20   :  { %p1056_p0 = por %p1055_p13, %p1054_p12 }
  0x22   :  { %p1057_p1 = pnand %p1056_p0, %p1050_p11 }
  0x24   :  { %1060 = shalt.err (!%p1057_p1)
}
  0x25   :  { %75 = dma.hbm_to_vmem [thread:$0]  %s1617_s7, 16, %s73_s16, [#allocation9]  }
  0x26   :  { %s1229_s22 = smov [#allocation2]   ;;  %s1230_s24 = smov [#allocation7]  }
  0x27   :  { %s32_s23 = sshll.u32 %s1229_s22, 4  ;;  %s55_s25 = sshll.u32 %s1230_s24, 4  ;;  %s33_s23 = int_to_ptr.vmem [resolvable:$true] %s32_s23  ;;  %s1344_s25 = int_to_ptr.vmem [resolvable:$true] %s55_s25 }
  0x28   :  { %s1061_s28 = scalar_lea.hbm %s1610_s0, 128 }
  0x29   :  { %p1062_p2 = scmp.ne.s32.totalorder %s1610_s0, %s1061_s28  ;;  %p1065_p3 = scmp.lt.u32.totalorder %s1061_s28, %s1610_s0 }
  0x2b   :  { %p1067_p4 = pnand %p1065_p3, %p1062_p2 }
  0x2d   :  { %1070 = shalt.err (!%p1067_p4)
}
  0x2e   :  { %s1071_s7 = scalar_lea.vmem %s33_s23, 128  ;;  %p1076_p6 = scmp.lt.s32.totalorder %s33_s23, %s33_s23 }
  0x2f   :  { %p1072_p5 = scmp.ne.s32.totalorder %s33_s23, %s1071_s7  ;;  %p1077_p7 = scmp.lt.s32.totalorder %s1071_s7, %s1071_s7 }
  0x31   :  { %p1078_p8 = por %p1077_p7, %p1076_p6 }
  0x33   :  { %p1079_p9 = pnand %p1078_p8, %p1072_p5 }
  0x35   :  { %1082 = shalt.err (!%p1079_p9)
}
  0x36   :  { %35 = dma.hbm_to_vmem [thread:$0]  %s1610_s0, 128, %s33_s23, [#allocation3]  }
  0x37   :  { %s1083_s1 = scalar_lea.hbm %s1614_s4, 512 }
  0x38   :  { %p1084_p10 = scmp.ne.s32.totalorder %s1614_s4, %s1083_s1  ;;  %p1087_p11 = scmp.lt.u32.totalorder %s1083_s1, %s1614_s4 }
  0x3a   :  { %p1089_p12 = pnand %p1087_p11, %p1084_p10 }
  0x3c   :  { %1092 = shalt.err (!%p1089_p12)
}
  0x3d   :  { %s1093_s27 = scalar_lea.vmem %s1344_s25, 512  ;;  %p1098_p0 = scmp.lt.s32.totalorder %s1344_s25, %s1344_s25 }
  0x3e   :  { %p1094_p13 = scmp.ne.s32.totalorder %s1344_s25, %s1093_s27  ;;  %p1099_p1 = scmp.lt.s32.totalorder %s1093_s27, %s1093_s27 }
  0x40   :  { %p1100_p2 = por %p1099_p1, %p1098_p0 }
  0x42   :  { %p1101_p3 = pnand %p1100_p2, %p1094_p13 }
  0x44   :  { %1104 = shalt.err (!%p1101_p3)
}
  0x45   :  { %s1231_s0 = smov 128   ;;  %s1232_s23 = smov 8  }
  0x46   :  { %61 = dma.hbm_to_vmem [thread:$0]  %s1614_s4, 512, %s1344_s25, [#allocation6], %s1231_s0, %s1231_s0, %s1232_s23  }
  0x47   :  { %s1233_s15 = smov [#allocation10]   ;;  %s1234_s18 = smov [#allocation11]  }
  0x48   :  { %s81_s17 = sshll.u32 %s1233_s15, 4  ;;  %s94_s7 = sshll.u32 %s1234_s18, 4  ;;  %s82_s17 = int_to_ptr.vmem [resolvable:$true] %s81_s17  ;;  %s95_s7 = int_to_ptr.vmem [resolvable:$true] %s94_s7 }
  0x49   :  { %s1105_s20 = scalar_lea.hbm %s1618_s8, 768 }
  0x4a   :  { %p1106_p4 = scmp.ne.s32.totalorder %s1618_s8, %s1105_s20  ;;  %p1109_p5 = scmp.lt.u32.totalorder %s1105_s20, %s1618_s8 }
  0x4c   :  { %p1111_p6 = pnand %p1109_p5, %p1106_p4 }
  0x4e   :  { %1114 = shalt.err (!%p1111_p6)
}
  0x4f   :  { %s1115_s4 = scalar_lea.vmem %s82_s17, 768  ;;  %p1120_p8 = scmp.lt.s32.totalorder %s82_s17, %s82_s17 }
  0x50   :  { %p1116_p7 = scmp.ne.s32.totalorder %s82_s17, %s1115_s4  ;;  %p1121_p9 = scmp.lt.s32.totalorder %s1115_s4, %s1115_s4 }
  0x52   :  { %p1122_p10 = por %p1121_p9, %p1120_p8 }
  0x54   :  { %p1123_p11 = pnand %p1122_p10, %p1116_p7 }
  0x56   :  { %1126 = shalt.err (!%p1123_p11)
}
  0x57   :  { %87 = dma.hbm_to_vmem [thread:$0]  %s1618_s8, 768, %s82_s17, [#allocation9], %s1231_s0, %s1231_s0, %s1232_s23  }
  0x58   :  { %s1127_s28 = scalar_lea.hbm %s1619_s9, 16 }
  0x59   :  { %p1128_p12 = scmp.ne.s32.totalorder %s1619_s9, %s1127_s28  ;;  %p1131_p13 = scmp.lt.u32.totalorder %s1127_s28, %s1619_s9 }
  0x5b   :  { %p1133_p0 = pnand %p1131_p13, %p1128_p12 }
  0x5d   :  { %1136 = shalt.err (!%p1133_p0)
}
  0x5e   :  { %s1137_s19 = scalar_lea.vmem %s95_s7, 16  ;;  %s1141_s20 = scalar_lea.vmem %s95_s7, 32 }
  0x5f   :  { %p1138_p1 = scmp.ne.s32.totalorder %s95_s7, %s1137_s19  ;;  %p1142_p2 = scmp.lt.s32.totalorder %s95_s7, %s95_s7 }
  0x60   :  { %p1143_p3 = scmp.lt.s32.totalorder %s1141_s20, %s1137_s19 }
  0x62   :  { %p1144_p4 = por %p1143_p3, %p1142_p2 }
  0x64   :  { %p1145_p5 = pnand %p1144_p4, %p1138_p1 }
  0x66   :  { %1148 = shalt.err (!%p1145_p5)
}
  0x67   :  { %97 = dma.hbm_to_vmem [thread:$0]  %s1619_s9, 16, %s95_s7, [#allocation12]  }
  0x68   :  { %1215 = dma.done.wait [#allocation3], 128  }
  0x69   :  { %1216 = vsyncadd [#allocation3], 4294967168 }
  0x6a   :  { %1217 = dma.done.wait [#allocation6], 640  }
  0x6b   :  { %1218 = vsyncadd [#allocation6], 4294966656 }
  0x6c   :  { %1219 = dma.done.wait [#allocation9], 784  }
  0x6d   :  { %1220 = vsyncadd [#allocation9], 4294966512 }
  0x6e   :  { %1221 = dma.done.wait [#allocation12], 16  }
  0x6f   :  { %1222 = vsyncadd [#allocation12], 4294967280  ;;  %v1235_v0 = vmov 0.0|0.0   ;;  %vm1236_vm0 = vmmov 0   ;;  %v1237_v1 = vmov 0.0   ;;  %v130_v2 = vld [vmem:[%s1616_s6] sm:$0xff] }
  0x70   :  { %954 = vmatprep.subr.bf16.mxu0 %v1235_v0  ;;  %897 = vmatprep.mubr.msk.f32.mxu0 %vm1236_vm0, %v1237_v1  ;;  %v131_v3 = vld [vmem:[%s1616_s6 + $0x8] sm:$0xff]  ;;  %v132_v4 = vld [vmem:[%s1616_s6 + $0x10] sm:$0xff]  ;;  %v133_v6 = vld [vmem:[%s1616_s6 + $0x18] sm:$0xff]  ;;  %vm141_vm1 = vcmask 261120   ;;  %s1238_s17 = smov 32   ;;  %vm457_vm2 = vcmask 1041409  }
  0x71   :  { %v955_v5 = vpack.c.bf16 %v131_v3, %v130_v2  ;;  %v215_v7 = vld [vmem:[#allocation7] sm:$0xff]  ;;  %v216_v8 = vld [vmem:[#allocation7 + $0x8] sm:$0xff]  ;;  %v217_v9 = vld [vmem:[#allocation7 + $0x10] sm:$0xff]  ;;  %v958_v11 = vpack.c.bf16 %v133_v6, %v132_v4  ;;  %vm459_vm3 = vcmask 1042434   ;;  %vm461_vm4 = vcmask 1043459   ;;  %s1240_s21 = smov 16  }
  0x72   :  { %v218_v10 = vld [vmem:[#allocation7 + $0x18] sm:$0xff]  ;;  %v960_v12 = vpack.c.bf16 %v216_v8, %v215_v7  ;;  %v1416_v14 = vld [vmem:[%s1612_s2] sm:$0xff]  ;;  %v1434_v17 = vld [vmem:[%s1612_s2 + $0x10] sm:$0xff]  ;;  %v408_v8 = vlaneseq  ;;  %vm463_vm5 = vcmask 1044484   ;;  %vm465_vm6 = vcmask 1045509   ;;  %s1241_s8 = smov 96  }
  0x73   :  { %956 = vmatpush3.bf16.msra.mxu0 %v955_v5  ;;  %v964_v13 = vpack.c.bf16 %v218_v10, %v217_v9  ;;  %908 = vmatprep.mubr.msk.f32.mxu1 %vm141_vm1, %v1416_v14  ;;  %v1421_v15 = vld [vmem:[#allocation5] sm:$0xff]  ;;  %v1445_v18 = vld [vmem:[%s1612_s2 + $0x18] sm:$0xff]  ;;  %v1450_v19 = vld [vmem:[%s1612_s2 + $0x20] sm:$0xff]  ;;  %vm467_vm7 = vcmask 1046534   ;;  %vm469_vm8 = vcmask 1047559   ;;  %vm473_vm10 = vcmask 64512  }
  0x74   :  { %957 = vmatprep.subr.bf16.mxu0 %v1235_v0  ;;  %961 = vmatprep.subr.bf16.mxu1 %v960_v12  ;;  %v1429_v16 = vld [vmem:[%s1612_s2 + $0x8] sm:$0xff]  ;;  %v1464_v21 = vld [vmem:[%s1612_s2 + $0x30] sm:$0xff]  ;;  %v1473_v22 = vld [vmem:[%s1612_s2 + $0x38] sm:$0xff]  ;;  %v1493_v10 = vshrl.u32 %v408_v8, 7  ;;  %vm577_vm11 = vcmask 130048   ;;  %vm592_vm12 = vcmask 392192  }
  0x75   :  { %963 = vmatpush3.bf16.msra.mxu1 %v960_v12  ;;  %v1459_v20 = vld [vmem:[%s1612_s2 + $0x28] sm:$0xff]  ;;  %v839_v23 = vld [vmem:[#allocation8] ss:$0 sm:$0xff]  ;;  %v849_v39 = vld [vmem:[%s1615_s5] ss:$0 sm:$0xff]  ;;  %vm717_vm13 = vcmask 523264  }
  0x76   :  { %965 = vmatprep.subr.bf16.mxu1 %v964_v13 }
  0x77   :  { %959 = vmatpush3.bf16.msra.mxu0 %v958_v11  ;;  %v424_v11 = vand.u32 127, %v408_v8 }
  0x78   :  { %968 = vmatprep.subr.bf16.mxu0 %v1235_v0 }
  0x79   :  { %967 = vmatpush3.bf16.msra.mxu1 %v964_v13  ;;  %v427_v13 = vsub.s32 %v424_v11, %v1493_v10  ;;  %v545_v11 = vsub.s32 7, %v1493_v10 }
  0x7a   :  { %898 = vmatmul.mubr.msk.f32.vlgmr.msra.gmra.mrb[0].mxu0 %vm141_vm1, %v1421_v15  ;;  %977 = vmatprep.subr.bf16.mxu1 %v1235_v0 }
  0x7b   :  { %932 = vmatprep.mubr.msk.f32.mxu0 %vm1236_vm0, %v1237_v1 }
  0x7c   :  { %909 = vmatmul.mubr.msk.f32.vlgmr.msra.gmra.mrb[0].mxu1 %vm141_vm1, %v1429_v16 }
  0x7d   :  { %911 = vmatprep.mubr.msk.f32.mxu1 %vm141_vm1, %v1434_v17 }
  0x80   :  { %912 = vmatmul.mubr.msk.f32.gmra.mrb[2].mxu1 %vm141_vm1, %v1445_v18 }
  0x81   :  { %914 = vmatprep.mubr.msk.f32.mxu1 %vm141_vm1, %v1450_v19 }
  0x84   :  { %915 = vmatmul.mubr.msk.f32.gmra.mrb[4].mxu1 %vm141_vm1, %v1459_v20 }
  0x85   :  { %917 = vmatprep.mubr.msk.f32.mxu1 %vm141_vm1, %v1464_v21 }
  0x88   :  { %918 = vmatmul.mubr.msk.f32.gmra.mrb[6].mxu1 %vm141_vm1, %v1473_v22 }
  0x89   :  { %951 = vmatprep.mubr.msk.f32.mxu1 %vm1236_vm0, %v1237_v1 }
 0x14d   :  { %v211_v24 = vpop.f32.mrb[0].mxu0 }
 0x14e   :  { %v1478_v25 = vadd.f32 %v839_v23, %v211_v24  ;;  %v899_v26 = vpop.f32.mrb[1].mxu0 }
 0x14f   :  { %v910_v27 = vpop.f32.mrb[0].mxu1 }
 0x150   :  { %349 = vrot.lane.b32.xlu0 %v1478_v25, %s1238_s17  ;;  %v309_v28 = vpop.f32.mrb[1].mxu1 }
 0x153   :  { %v913_v29 = vpop.f32.mrb[2].mxu1 }
 0x154   :  { %v319_v30 = vpop.f32.mrb[3].mxu1 }
 0x157   :  { %v916_v31 = vpop.f32.mrb[4].mxu1 }
 0x158   :  { %v329_v32 = vpop.f32.mrb[5].mxu1 }
 0x15b   :  { %v919_v33 = vpop.f32.mrb[6].mxu1 }
 0x15c   :  { %v339_v34 = vpop.f32.mrb[7].mxu1 }
 0x1c2   :  { %v350_v35 = vpop.permute.xlu0 %349 }
 0x1c3   :  { %v353_v36 = vadd.f32 %v910_v27, %v350_v35  ;;  %v352_v37 = vadd.f32 %v350_v35, %v309_v28  ;;  %v354_v38 = vadd.f32 %v350_v35, %v319_v30  ;;  %v355_v43 = vadd.f32 %v913_v29, %v350_v35 }
 0x1c4   :  { %v356_v46 = vadd.f32 %v350_v35, %v329_v32  ;;  %v357_v54 = vadd.f32 %v916_v31, %v350_v35  ;;  %v358_v58 = vadd.f32 %v350_v35, %v339_v34  ;;  %v359_v62 = vadd.f32 %v919_v33, %v350_v35 }
 0x1c5   :  { %v361_v40 = vmax.f32 %v353_v36, 0.0  ;;  %v360_v41 = vmax.f32 %v352_v37, 0.0  ;;  %v362_v42 = vmax.f32 %v354_v38, 0.0  ;;  %v363_v50 = vmax.f32 %v355_v43, 0.0  ;;  %v850_v36 = vld [vmem:[%s1613_s3] ss:$0 sm:$0xff] }
 0x1c6   :  { %v364_v53 = vmax.f32 %v356_v46, 0.0  ;;  %v365_v57 = vmax.f32 %v357_v54, 0.0  ;;  %v366_v61 = vmax.f32 %v358_v58, 0.0  ;;  %v367_v2 = vmax.f32 %v359_v62, 0.0  ;;  %s1239_s3 = smov 64  }
 0x1c7   :  { %v376_v44 = vmul.f32 %v849_v39, %v361_v40  ;;  %v375_v45 = vmul.f32 %v849_v39, %v360_v41  ;;  %v377_v49 = vmul.f32 %v849_v39, %v362_v42  ;;  %v378_v52 = vmul.f32 %v849_v39, %v363_v50 }
 0x1c8   :  { %v379_v56 = vmul.f32 %v849_v39, %v364_v53  ;;  %v380_v60 = vmul.f32 %v849_v39, %v365_v57  ;;  %v381_v1 = vmul.f32 %v849_v39, %v366_v61  ;;  %v382_v4 = vmul.f32 %v849_v39, %v367_v2 }
 0x1c9   :  { %v386_v47 = vsel %vm141_vm1, %v376_v44, 0.0  ;;  %v383_v48 = vsel %vm141_vm1, %v375_v45, 0.0  ;;  %v389_v51 = vsel %vm141_vm1, %v377_v49, 0.0  ;;  %v392_v55 = vsel %vm141_vm1, %v378_v52, 0.0 }
 0x1ca   :  { %387 = vadd.xlane.f32.xlu1 %v386_v47  ;;  %384 = vadd.xlane.f32.xlu0 %v383_v48  ;;  %v395_v59 = vsel %vm141_vm1, %v379_v56, 0.0  ;;  %v398_v63 = vsel %vm141_vm1, %v380_v60, 0.0  ;;  %v401_v3 = vsel %vm141_vm1, %v381_v1, 0.0  ;;  %v404_v5 = vsel %vm141_vm1, %v382_v4, 0.0 }
 0x1cb   :  { %vm414_vm9 = vcmp.lt.s32.totalorder %v1493_v10, %v850_v36  ;;  %v496_v1 = vsub.s32 0, %v1493_v10  ;;  %v584_v36 = vld [vmem:[#allocation10 + $0x28] sm:$0xff] }
 0x1ce   :  { %390 = vadd.xlane.f32.xlu1 %v389_v51 }
 0x1d2   :  { %393 = vadd.xlane.f32.xlu1 %v392_v55 }
 0x1d6   :  { %396 = vadd.xlane.f32.xlu1 %v395_v59 }
 0x1da   :  { %399 = vadd.xlane.f32.xlu1 %v398_v63  ;;  %v503_v63 = vsub.s32 1, %v1493_v10 }
 0x1de   :  { %402 = vadd.xlane.f32.xlu1 %v401_v3 }
 0x1e2   :  { %405 = vadd.xlane.f32.xlu1 %v404_v5 }
 0x257   :  { %v388_v6 = vpop.xlane.xlu1 %387  ;;  %v385_v23 = vpop.xlane.xlu0 %384 }
 0x258   :  { %v432_v26 = vrot.slane %v388_v6, %v427_v13  ;;  %v428_v27 = vrot.slane %v385_v23, %v427_v13  ;;  %v531_v6 = vsub.s32 5, %v1493_v10 }
 0x25a   :  { %v458_v32 = vsel %vm457_vm2, %v432_v26, %v428_v27  ;;  %v538_v27 = vsub.s32 6, %v1493_v10 }
 0x25b   :  { %v391_v7 = vpop.xlane.xlu1 %390 }
 0x25c   :  { %v436_v28 = vrot.slane %v391_v7, %v427_v13  ;;  %v510_v7 = vsub.s32 2, %v1493_v10 }
 0x25e   :  { %v460_v34 = vsel %vm459_vm3, %v436_v28, %v458_v32  ;;  %v579_v28 = vld [vmem:[#allocation10] sm:$0xff]  ;;  %v582_v32 = vld [vmem:[#allocation10 + $0x18] sm:$0xff] }
 0x25f   :  { %v394_v9 = vpop.xlane.xlu1 %393 }
 0x260   :  { %v440_v29 = vrot.slane %v394_v9, %v427_v13 }
 0x262   :  { %v462_v37 = vsel %vm461_vm4, %v440_v29, %v460_v34  ;;  %v580_v29 = vld [vmem:[#allocation10 + $0x8] sm:$0xff] }
 0x263   :  { %v397_v12 = vpop.xlane.xlu1 %396 }
 0x264   :  { %v444_v30 = vrot.slane %v397_v12, %v427_v13  ;;  %v517_v12 = vsub.s32 3, %v1493_v10 }
 0x266   :  { %v464_v38 = vsel %vm463_vm5, %v444_v30, %v462_v37  ;;  %v581_v30 = vld [vmem:[#allocation10 + $0x10] sm:$0xff] }
 0x267   :  { %v400_v24 = vpop.xlane.xlu1 %399 }
 0x268   :  { %v448_v33 = vrot.slane %v400_v24, %v427_v13  ;;  %v524_v24 = vsub.s32 4, %v1493_v10 }
 0x26a   :  { %v466_v40 = vsel %vm465_vm6, %v448_v33, %v464_v38  ;;  %v972_v33 = vpack.c.bf16 %v582_v32, %v581_v30  ;;  %v708_v32 = vld [vmem:[%s1620_s10 + $0x30] sm:$0xff] }
 0x26b   :  { %v403_v31 = vpop.xlane.xlu1 %402 }
 0x26c   :  { %v452_v35 = vrot.slane %v403_v31, %v427_v13  ;;  %v969_v31 = vpack.c.bf16 %v580_v29, %v579_v28  ;;  %v706_v28 = vld [vmem:[%s1620_s10 + $0x20] sm:$0xff]  ;;  %v707_v29 = vld [vmem:[%s1620_s10 + $0x28] sm:$0xff] }
 0x26d   :  { %v984_v30 = vpack.c.bf16 %v707_v29, %v706_v28 }
 0x26e   :  { %v468_v42 = vsel %vm467_vm7, %v452_v35, %v466_v40  ;;  %970 = vmatpush3.bf16.msra.mxu0 %v969_v31  ;;  %v583_v35 = vld [vmem:[#allocation10 + $0x20] sm:$0xff] }
 0x26f   :  { %v406_v39 = vpop.xlane.xlu1 %405  ;;  %971 = vmatprep.subr.bf16.mxu0 %v1235_v0  ;;  %v975_v10 = vpack.c.bf16 %v584_v36, %v583_v35 }
 0x270   :  { %v456_v41 = vrot.slane %v406_v39, %v427_v13 }
 0x272   :  { %v470_v43 = vsel %vm469_vm8, %v456_v41, %v468_v42  ;;  %973 = vmatpush3.bf16.msra.mxu0 %v972_v33  ;;  %v709_v33 = vld [vmem:[%s1620_s10 + $0x38] sm:$0xff] }
 0x273   :  { %v472_v44 = vsel %vm414_vm9, %v470_v43, -1e+30  ;;  %974 = vmatprep.subr.bf16.mxu0 %v1235_v0 }
 0x274   :  { %v474_v45 = vsel %vm473_vm10, %v472_v44, -inf }
 0x275   :  { %v475_v46 = vrot.slane %v474_v45, 4 }
 0x276   :  { %976 = vmatpush3.bf16.msra.mxu0 %v975_v10 }
 0x277   :  { %v476_v47 = vmax.f32 %v474_v45, %v475_v46 }
 0x279   :  { %v477_v48 = vrot.slane %v476_v47, 2 }
 0x27b   :  { %v478_v49 = vmax.f32 %v476_v47, %v477_v48 }
 0x27d   :  { %v479_v50 = vrot.slane %v478_v49, 1 }
 0x27f   :  { %v480_v51 = vmax.f32 %v478_v49, %v479_v50 }
 0x281   :  { %v481_v52 = vsub.f32 %v472_v44, %v480_v51 }
 0x283   :  { %v482_v53 = vmul.f32 1.442695, %v481_v52 }
 0x285   :  { %1007 = vpow2.f32 %v482_v53 }
 0x28f   :  { %v1008_v54 = vpop.eup %1007 }
 0x290   :  { %v484_v55 = vsel %vm414_vm9, %v1008_v54, 0.0 }
 0x291   :  { %v485_v56 = vsel %vm473_vm10, %v484_v55, 0.0 }
 0x292   :  { %v486_v57 = vrot.slane %v485_v56, 4 }
 0x294   :  { %v487_v58 = vadd.f32 %v486_v57, %v485_v56 }
 0x296   :  { %v488_v59 = vrot.slane %v487_v58, 2 }
 0x298   :  { %v489_v60 = vadd.f32 %v488_v59, %v487_v58 }
 0x29a   :  { %v490_v61 = vrot.slane %v489_v60, 1 }
 0x29c   :  { %v491_v62 = vadd.f32 %v490_v61, %v489_v60 }
 0x29e   :  { %1009 = vrcp.f32 %v491_v62 }
 0x2a8   :  { %v1010_v2 = vpop.eup %1009 }
 0x2a9   :  { %v493_v3 = vmul.f32 %v1010_v2, %v484_v55  ;;  %v851_v2 = vld [vmem:[#allocation11] ss:$0 sm:$0xff] }
 0x2ab   :  { %793 = vst.msk [vmem:[#allocation16] sm:$0xff] %vm473_vm10, %v493_v3  ;;  %v504_v4 = vrot.slane %v493_v3, %v503_v63  ;;  %v497_v5 = vrot.slane %v493_v3, %v496_v1  ;;  %v532_v8 = vrot.slane %v493_v3, %v531_v6  ;;  %v511_v9 = vrot.slane %v493_v3, %v510_v7 }
 0x2ac   :  { %v546_v13 = vrot.slane %v493_v3, %v545_v11  ;;  %v518_v23 = vrot.slane %v493_v3, %v517_v12  ;;  %v525_v26 = vrot.slane %v493_v3, %v524_v24  ;;  %v539_v34 = vrot.slane %v493_v3, %v538_v27  ;;  %v704_v24 = vld [vmem:[%s1620_s10 + $0x10] sm:$0xff] }
 0x2ad   :  { %506 = vbcast.lane.b32.xlu0 %v504_v4, 256  ;;  %499 = vbcast.lane.b32.xlu1 %v497_v5, 256 }
 0x2b1   :  { %534 = vbcast.lane.b32.xlu0 %v532_v8, 256  ;;  %513 = vbcast.lane.b32.xlu1 %v511_v9, 256 }
 0x2b5   :  { %548 = vbcast.lane.b32.xlu0 %v546_v13, 256  ;;  %520 = vbcast.lane.b32.xlu1 %v518_v23, 256  ;;  %v703_v23 = vld [vmem:[%s1620_s10 + $0x8] sm:$0xff] }
 0x2b9   :  { %673 = vrot.lane.b32.xlu0 %v1478_v25, %s1239_s3  ;;  %527 = vbcast.lane.b32.xlu1 %v525_v26, 256 }
 0x2bd   :  { %541 = vbcast.lane.b32.xlu1 %v539_v34, 256  ;;  %v987_v34 = vpack.c.bf16 %v709_v33, %v708_v32 }
 0x31f   :  { %v507_v37 = vpop.permute.xlu0 %506  ;;  %v500_v38 = vpop.permute.xlu1 %499 }
 0x320   :  { %v551_v39 = vmul.f32 %v507_v37, %v1429_v16  ;;  %v550_v40 = vmul.f32 %v500_v38, %v1416_v14 }
 0x322   :  { %v559_v43 = vsel %vm141_vm1, %v551_v39, 0.0  ;;  %v558_v44 = vsel %vm141_vm1, %v550_v40, 0.0 }
 0x323   :  { %v514_v41 = vpop.permute.xlu1 %513  ;;  %v535_v45 = vpop.permute.xlu0 %534  ;;  %v560_v49 = vadd.f32 %v559_v43, %v558_v44 }
 0x324   :  { %v552_v42 = vmul.f32 %v514_v41, %v1434_v17  ;;  %v555_v14 = vmul.f32 %v535_v45, %v1459_v20 }
 0x326   :  { %v561_v47 = vsel %vm141_vm1, %v552_v42, 0.0  ;;  %v567_v57 = vsel %vm141_vm1, %v555_v14, 0.0 }
 0x327   :  { %v521_v46 = vpop.permute.xlu1 %520  ;;  %v562_v51 = vadd.f32 %v561_v47, %v560_v49  ;;  %v549_v17 = vpop.permute.xlu0 %548 }
 0x328   :  { %v553_v48 = vmul.f32 %v521_v46, %v1445_v18  ;;  %v557_v58 = vmul.f32 %v549_v17, %v1473_v22 }
 0x32a   :  { %v563_v50 = vsel %vm141_vm1, %v553_v48, 0.0  ;;  %v571_v20 = vsel %vm141_vm1, %v557_v58, 0.0 }
 0x32b   :  { %v528_v16 = vpop.permute.xlu1 %527  ;;  %v564_v53 = vadd.f32 %v563_v50, %v562_v51  ;;  %v674_v9 = vpop.permute.xlu0 %673 }
 0x32c   :  { %v554_v52 = vmul.f32 %v528_v16, %v1450_v19  ;;  %v120_v19 = vld [vmem:[#allocation2] sm:$0xff] }
 0x32e   :  { %v565_v54 = vsel %vm141_vm1, %v554_v52, 0.0 }
 0x32f   :  { %v566_v55 = vadd.f32 %v565_v54, %v564_v53  ;;  %v542_v56 = vpop.permute.xlu1 %541 }
 0x330   :  { %v556_v18 = vmul.f32 %v542_v56, %v1464_v21 }
 0x331   :  { %v568_v59 = vadd.f32 %v567_v57, %v566_v55 }
 0x332   :  { %v569_v60 = vsel %vm141_vm1, %v556_v18, 0.0 }
 0x333   :  { %v570_v61 = vadd.f32 %v569_v60, %v568_v59 }
 0x335   :  { %v572_v62 = vadd.f32 %v571_v20, %v570_v61 }
 0x337   :  { %574 = vrot.lane.b32.xlu1 %v572_v62, %s1240_s21 }
 0x3a9   :  { %v575_v63 = vpop.permute.xlu1 %574 }
 0x3aa   :  { %v578_v1 = vsel %vm577_vm11, %v120_v19, %v575_v63 }
 0x3ab   :  { %933 = vmatmul.mubr.msk.f32.vlgmr.msra.gmra.mrb[2].mxu0 %vm592_vm12, %v578_v1 }
 0x47e   :  { %v662_v22 = vpop.f32.mrb[2].mxu0 }
 0x47f   :  { %v663_v3 = vadd.f32 %v851_v2, %v662_v22  ;;  %v934_v21 = vpop.f32.mrb[3].mxu0 }
 0x481   :  { %v666_v4 = vadd.f32 %v663_v3, %v1478_v25  ;;  %v702_v25 = vld [vmem:[%s1620_s10] sm:$0xff] }
 0x482   :  { %v978_v26 = vpack.c.bf16 %v703_v23, %v702_v25 }
 0x483   :  { %v853_v5 = vmul.f32 -1.442695, %v666_v4 }
 0x484   :  { %979 = vmatpush3.bf16.msra.mxu1 %v978_v26 }
 0x485   :  { %1011 = vpow2.f32 %v853_v5  ;;  %980 = vmatprep.subr.bf16.mxu1 %v1235_v0 }
 0x48f   :  { %v1012_v6 = vpop.eup %1011 }
 0x490   :  { %v670_v7 = vadd.f32 1.0, %v1012_v6 }
 0x492   :  { %1013 = vrcp.f32 %v670_v7 }
 0x49c   :  { %v1014_v8 = vpop.eup %1013 }
 0x49d   :  { %v676_v11 = vmul.f32 %v1014_v8, %v674_v9  ;;  %v683_v36 = vsub.f32 1.0, %v1014_v8 }
 0x49f   :  { %678 = vrot.lane.b32.xlu1 %v676_v11, %s1239_s3 }
 0x4a3   :  { %689 = vrot.lane.b32.xlu1 %v1421_v15, %s1238_s17  ;;  %v705_v15 = vld [vmem:[%s1620_s10 + $0x18] sm:$0xff]  ;;  %s1242_s10 = smov [#allocation14]  }
 0x4a4   :  { %v981_v27 = vpack.c.bf16 %v705_v15, %v704_v24  ;;  %s810_s0 = sshll.u32 %s1242_s10, 4  ;;  %s811_s0 = int_to_ptr.vmem [resolvable:$true] %s810_s0 }
 0x4a5   :  { %s1149_s23 = scalar_lea.vmem %s811_s0, 128  ;;  %p1154_p7 = scmp.lt.s32.totalorder %s811_s0, %s811_s0 }
 0x4a6   :  { %982 = vmatpush3.bf16.msra.mxu1 %v981_v27  ;;  %p1150_p6 = scmp.ne.s32.totalorder %s811_s0, %s1149_s23  ;;  %p1155_p8 = scmp.lt.s32.totalorder %s1149_s23, %s1149_s23 }
 0x4a7   :  { %698 = vrot.lane.b32.xlu1 %v572_v62, %s1238_s17  ;;  %983 = vmatprep.subr.bf16.mxu1 %v1235_v0 }
 0x4a8   :  { %p1156_p9 = por %p1155_p8, %p1154_p7 }
 0x4aa   :  { %985 = vmatpush3.bf16.msra.mxu1 %v984_v30  ;;  %p1157_p10 = pnand %p1156_p9, %p1150_p6 }
 0x4ab   :  { %986 = vmatprep.subr.bf16.mxu1 %v1235_v0 }
 0x4ae   :  { %988 = vmatpush3.bf16.msra.mxu1 %v987_v34 }
 0x511   :  { %v679_v12 = vpop.permute.xlu1 %678 }
 0x512   :  { %v681_v13 = vadd.f32 %v679_v12, %v663_v3 }
 0x514   :  { %1015 = vtanh.f32 %v681_v13 }
 0x515   :  { %v690_v35 = vpop.permute.xlu1 %689 }
 0x516   :  { %v692_v37 = vmul.f32 %v1014_v8, %v690_v35 }
 0x519   :  { %v699_v40 = vpop.permute.xlu1 %698 }
 0x51e   :  { %v1016_v31 = vpop.eup %1015 }
 0x51f   :  { %685 = vrot.lane.b32.xlu0 %v1016_v31, %s1241_s8 }
 0x591   :  { %v686_v10 = vpop.permute.xlu0 %685 }
 0x592   :  { %v688_v38 = vmul.f32 %v686_v10, %v683_v36 }
 0x594   :  { %v693_v39 = vadd.f32 %v692_v37, %v688_v38 }
 0x596   :  { %695 = vrot.lane.b32.xlu0 %v693_v39, %s1241_s8 }
 0x608   :  { %v696_v41 = vpop.permute.xlu0 %695 }
 0x609   :  { %v701_v42 = vsel %vm141_vm1, %v696_v41, %v699_v40  ;;  %792 = vst.msk [vmem:[#allocation14] sm:$0xff] %vm141_vm1, %v696_v41 }
 0x60a   :  { %952 = vmatmul.mubr.msk.f32.vlgmr.msra.gmra.mrb[8].mxu1 %vm717_vm13, %v701_v42 }
 0x60b   :  { %1160 = shalt.err (!%p1157_p10)
}
 0x60c   :  { %s1161_s9 = scalar_lea.hbm %s1623_s13, 128 }
 0x60d   :  { %p1162_p11 = scmp.ne.s32.totalorder %s1623_s13, %s1161_s9  ;;  %p1165_p12 = scmp.lt.u32.totalorder %s1161_s9, %s1623_s13 }
 0x60f   :  { %p1167_p13 = pnand %p1165_p12, %p1162_p11 }
 0x611   :  { %1170 = shalt.err (!%p1167_p13)
}
 0x612   :  { %813 = dma.vmem_to_hbm [thread:$0]  %s811_s0, 128, %s1623_s13, [#allocation15]  }
 0x613   :  { %s1243_s22 = smov [#allocation16]  }
 0x614   :  { %s820_s4 = sshll.u32 %s1243_s22, 4  ;;  %s821_s4 = int_to_ptr.vmem [resolvable:$true] %s820_s4 }
 0x615   :  { %s1171_s25 = scalar_lea.vmem %s821_s4, 128  ;;  %p1176_p1 = scmp.lt.s32.totalorder %s821_s4, %s821_s4 }
 0x616   :  { %p1172_p0 = scmp.ne.s32.totalorder %s821_s4, %s1171_s25  ;;  %p1177_p2 = scmp.lt.s32.totalorder %s1171_s25, %s1171_s25 }
 0x618   :  { %p1178_p3 = por %p1177_p2, %p1176_p1 }
 0x61a   :  { %p1179_p4 = pnand %p1178_p3, %p1172_p0 }
 0x61c   :  { %1182 = shalt.err (!%p1179_p4)
}
 0x61d   :  { %s1183_s26 = scalar_lea.hbm %s1624_s14, 128 }
 0x61e   :  { %p1184_p5 = scmp.ne.s32.totalorder %s1624_s14, %s1183_s26  ;;  %p1187_p6 = scmp.lt.u32.totalorder %s1183_s26, %s1624_s14 }
 0x620   :  { %p1189_p7 = pnand %p1187_p6, %p1184_p5 }
 0x622   :  { %1192 = shalt.err (!%p1189_p7)
}
 0x623   :  { %823 = dma.vmem_to_hbm [thread:$0]  %s821_s4, 128, %s1624_s14, [#allocation15]   ;;  %v854_v0 = vld [vmem:[%s1621_s11] ss:$0 sm:$0xff] }
 0x624   :  { %s1244_s20 = smov [#allocation13]  }
 0x625   :  { %s800_s8 = sshll.u32 %s1244_s20, 4  ;;  %s801_s8 = int_to_ptr.vmem [resolvable:$true] %s800_s8 }
 0x626   :  { %s1193_s10 = scalar_lea.vmem %s801_s8, 128  ;;  %p1198_p9 = scmp.lt.s32.totalorder %s801_s8, %s801_s8 }
 0x627   :  { %p1194_p8 = scmp.ne.s32.totalorder %s801_s8, %s1193_s10  ;;  %p1199_p10 = scmp.lt.s32.totalorder %s1193_s10, %s1193_s10 }
 0x629   :  { %p1200_p11 = por %p1199_p10, %p1198_p9 }
 0x62b   :  { %p1201_p12 = pnand %p1200_p11, %p1194_p8 }
 0x6dd   :  { %v787_v43 = vpop.f32.mrb[8].mxu1 }
 0x6de   :  { %v788_v44 = vadd.f32 %v854_v0, %v787_v43  ;;  %v953_v45 = vpop.f32.mrb[9].mxu1 }
 0x6e0   :  { %791 = vst.msk [vmem:[#allocation13] sm:$0xff] %vm577_vm11, %v788_v44 }
 0x6e1   :  { %1204 = shalt.err (!%p1201_p12)
}
 0x6e2   :  { %s1205_s23 = scalar_lea.hbm %s1622_s12, 128 }
 0x6e3   :  { %p1206_p13 = scmp.ne.s32.totalorder %s1622_s12, %s1205_s23  ;;  %p1209_p0 = scmp.lt.u32.totalorder %s1205_s23, %s1622_s12 }
 0x6e5   :  { %p1211_p1 = pnand %p1209_p0, %p1206_p13 }
 0x6e7   :  { %1214 = shalt.err (!%p1211_p1)
}
 0x6e8   :  { %803 = dma.vmem_to_hbm [thread:$0]  %s801_s8, 128, %s1622_s12, [#allocation4]  }
 0x6e9   :  { %1223 = dma.done.wait [#allocation4], 128  }
 0x6ea   :  { %1224 = vsyncadd [#allocation4], 4294967168 }
 0x6eb   :  { %1225 = dma.done.wait [#allocation15], 256  }
 0x6ec   :  { %1226 = vsyncadd [#allocation15], 4294967040 }
 0x6ed   :  { %833 = vsyncpa [#allocation3], 1 }
 0x6ee   :  { %834 = vsyncpa [#allocation6], 1 }
 0x6ef   :  { %835 = vsyncpa [#allocation9], 1 }
 0x6f0   :  { %836 = vsyncpa [#allocation12], 1 }
 0x6f1   :  { %837 = vsyncpa [#allocation4], 1 }
 0x6f2   :  { %838 = vsyncpa [#allocation15], 1 }

</bundles_post_ra>
